<compile_context>
chip_gen: v6e
topology: v6e:2x2x1
jax: 0.10.0
libtpu: 0.0.40
codegen_flags: <defaults>
</compile_context>

<pallas_src>
import functools

import jax
import jax.numpy as jnp
from jax.experimental import pallas as pl
from jax.experimental.pallas import tpu as pltpu


_GELU_C = 0.7978845608028654  # sqrt(2/pi)
_VMEM_LIMIT = 32 * 1024 * 1024  # safe on v5e/v6e/v7x (raises v5e's 16 MiB default)


def _gelu(x):
    # GPT-2 "new" GELU (tanh approximation), computed in f32.
    return 0.5 * x * (1.0 + jnp.tanh(_GELU_C * (x + 0.044715 * x * x * x)))


def _tile(dim, target, align):
    """Largest block size <= target that evenly divides dim (prefer multiples of align)."""
    if dim <= target:
        return dim
    t = (target // align) * align
    while t >= align:
        if dim % t == 0:
            return t
        t -= align
    for t in range(target, 0, -1):
        if dim % t == 0:
            return t
    return dim


# ----------------------------------------------------------------------------
# Fused LayerNorm + matmul + bias (+ optional GELU)      y = act(LN(x) @ W + b)
# ----------------------------------------------------------------------------
def _ln_matmul_kernel(x_ref, w_ref, b_ref, g_ref, bt_ref, o_ref, *, eps, activation):
    x = x_ref[...].astype(jnp.float32)                         # (tm, K)
    mean = jnp.mean(x, axis=-1, keepdims=True)
    var = jnp.mean((x - mean) * (x - mean), axis=-1, keepdims=True)
    xn = (x - mean) * jax.lax.rsqrt(var + eps)
    xn = xn * g_ref[...] + bt_ref[...]
    acc = jnp.dot(xn.astype(jnp.bfloat16), w_ref[...],
                  preferred_element_type=jnp.float32)          # (tm, tn) f32
    acc = acc + b_ref[...]
    if activation == "gelu":
        acc = _gelu(acc)
    o_ref[...] = acc.astype(o_ref.dtype)


def ln_matmul_bias(x, w, b, gamma, beta, activation=None, eps=1e-5,
                   out_dtype=jnp.bfloat16, tm=256, tn=512):
    """act(LayerNorm(x) @ w + b).  x:(M,K) f32, w:(K,N) bf16, b/gamma/beta:(K,) or (N,)."""
    M, K = x.shape
    _, N = w.shape
    tm = _tile(M, tm, 8)
    tn = _tile(N, tn, 128)
    kernel = functools.partial(_ln_matmul_kernel, eps=eps, activation=activation)
    cost = pl.CostEstimate(
        flops=int(2 * M * N * K),
        transcendentals=int(M * N) if activation == "gelu" else 0,
        bytes_accessed=int(M * K * 4 + K * N * 2 + M * N * 2))
    return pl.pallas_call(
        kernel,
        out_shape=jax.ShapeDtypeStruct((M, N), out_dtype),
        grid=(M // tm, N // tn),
        in_specs=[
            pl.BlockSpec((tm, K), lambda i, j: (i, 0)),
            pl.BlockSpec((K, tn), lambda i, j: (0, j)),
            pl.BlockSpec((1, tn), lambda i, j: (0, j)),
            pl.BlockSpec((1, K), lambda i, j: (0, 0)),
            pl.BlockSpec((1, K), lambda i, j: (0, 0)),
        ],
        out_specs=pl.BlockSpec((tm, tn), lambda i, j: (i, j)),
        compiler_params=pltpu.CompilerParams(
            dimension_semantics=("parallel", "parallel"),
            vmem_limit_bytes=_VMEM_LIMIT),
        cost_estimate=cost,
    )(x, w.astype(jnp.bfloat16),
      b.reshape(1, N).astype(jnp.float32),
      gamma.reshape(1, K).astype(jnp.float32),
      beta.reshape(1, K).astype(jnp.float32))


# ----------------------------------------------------------------------------
# K-tiled matmul with accumulator, fused bias (+GELU) (+residual) epilogue
# ----------------------------------------------------------------------------
def _mm_acc_kernel(x_ref, w_ref, b_ref, *rest, activation, has_residual):
    if has_residual:
        r_ref, o_ref, acc_ref = rest
    else:
        r_ref = None
        o_ref, acc_ref = rest
    k = pl.program_id(2)

    @pl.when(k == 0)
    def _():
        acc_ref[...] = jnp.zeros_like(acc_ref)

    acc_ref[...] += jnp.dot(x_ref[...].astype(jnp.bfloat16), w_ref[...],
                            preferred_element_type=jnp.float32)

    @pl.when(k == pl.num_programs(2) - 1)
    def _():
        out = acc_ref[...] + b_ref[...]
        if activation == "gelu":
            out = _gelu(out)
        if r_ref is not None:
            out = out + r_ref[...].astype(jnp.float32)
        o_ref[...] = out.astype(o_ref.dtype)


def matmul_bias_residual(x, w, b, residual=None, activation=None, out_dtype=None,
                         tm=256, tn=512, tk=512):
    """y = act(x @ w + b) (+ residual).  x:(M,K), w:(K,N) bf16, b:(N,)."""
    M, K = x.shape
    _, N = w.shape
    tm = _tile(M, tm, 8)
    tn = _tile(N, tn, 128)
    tk = _tile(K, tk, 128)
    if out_dtype is None:
        out_dtype = jnp.float32 if residual is not None else jnp.bfloat16
    has_res = residual is not None
    kernel = functools.partial(_mm_acc_kernel, activation=activation,
                               has_residual=has_res)
    in_specs = [
        pl.BlockSpec((tm, tk), lambda i, j, k: (i, k)),
        pl.BlockSpec((tk, tn), lambda i, j, k: (k, j)),
        pl.BlockSpec((1, tn), lambda i, j, k: (0, j)),
    ]
    args = [x, w.astype(jnp.bfloat16), b.reshape(1, N).astype(jnp.float32)]
    if has_res:
        in_specs.append(pl.BlockSpec((tm, tn), lambda i, j, k: (i, j)))
        args.append(residual)
    cost = pl.CostEstimate(
        flops=int(2 * M * N * K),
        transcendentals=int(M * N) if activation == "gelu" else 0,
        bytes_accessed=int(M * K * x.dtype.itemsize + K * N * 2 + 2 * M * N * 4))
    return pl.pallas_call(
        kernel,
        out_shape=jax.ShapeDtypeStruct((M, N), out_dtype),
        grid=(M // tm, N // tn, K // tk),
        in_specs=in_specs,
        out_specs=pl.BlockSpec((tm, tn), lambda i, j, k: (i, j)),
        scratch_shapes=[pltpu.VMEM((tm, tn), jnp.float32)],
        compiler_params=pltpu.CompilerParams(
            dimension_semantics=("parallel", "parallel", "arbitrary"),
            vmem_limit_bytes=_VMEM_LIMIT),
        cost_estimate=cost,
    )(*args)


# ----------------------------------------------------------------------------
# Row-tiled LayerNorm (used only for the final ln_f)
# ----------------------------------------------------------------------------
def _layernorm_kernel(x_ref, g_ref, b_ref, o_ref, *, eps):
    x = x_ref[...].astype(jnp.float32)
    mean = jnp.mean(x, axis=-1, keepdims=True)
    var = jnp.mean((x - mean) * (x - mean), axis=-1, keepdims=True)
    y = (x - mean) * jax.lax.rsqrt(var + eps)
    o_ref[...] = (y * g_ref[...] + b_ref[...]).astype(o_ref.dtype)


def layernorm(x, g, b, eps=1e-5, out_dtype=jnp.float32, tm=512):
    M, H = x.shape
    tm = _tile(M, tm, 8)
    kernel = functools.partial(_layernorm_kernel, eps=eps)
    return pl.pallas_call(
        kernel,
        out_shape=jax.ShapeDtypeStruct((M, H), out_dtype),
        grid=(M // tm,),
        in_specs=[
            pl.BlockSpec((tm, H), lambda i: (i, 0)),
            pl.BlockSpec((1, H), lambda i: (0, 0)),
            pl.BlockSpec((1, H), lambda i: (0, 0)),
        ],
        out_specs=pl.BlockSpec((tm, H), lambda i: (i, 0)),
        compiler_params=pltpu.CompilerParams(
            dimension_semantics=("parallel",),
            vmem_limit_bytes=_VMEM_LIMIT),
    )(x, g.reshape(1, H).astype(jnp.float32), b.reshape(1, H).astype(jnp.float32))


# ----------------------------------------------------------------------------
# Attention: grid over (batch, head-group); mask built in-kernel
# ----------------------------------------------------------------------------
def _attention_kernel(q_ref, k_ref, v_ref, m_ref, o_ref, *, scale):
    q = q_ref[0].astype(jnp.float32) * scale                    # (hg, S, Dh)
    kk = k_ref[0].astype(jnp.bfloat16)
    vv = v_ref[0].astype(jnp.bfloat16)
    s = jnp.einsum("hqd,hkd->hqk", q.astype(jnp.bfloat16), kk,
                   preferred_element_type=jnp.float32)          # (hg, S, S)
    S = s.shape[-1]
    qi = jax.lax.broadcasted_iota(jnp.int32, (S, S), 0)
    ki = jax.lax.broadcasted_iota(jnp.int32, (S, S), 1)
    key_ok = (m_ref[...] > 0.5)[0]                              # (1, S)
    allowed = (qi >= ki) & key_ok                               # (S, S)
    s = jnp.where(allowed[None, :, :], s, -1e9)
    m = jnp.max(s, axis=-1, keepdims=True)
    p = jnp.exp(s - m)
    l = jnp.sum(p, axis=-1, keepdims=True)
    o = jnp.einsum("hqk,hkd->hqd", p.astype(jnp.bfloat16), vv,
                   preferred_element_type=jnp.float32)
    o = o * pl.reciprocal(l, approx=True)
    o_ref[0] = o.astype(o_ref.dtype)


def _heads_per_block(n_head, S, budget=8 * 1024 * 1024):
    best = 1
    for hg in range(1, n_head + 1):
        if n_head % hg == 0 and hg * S * S * 4 * 2 <= budget:
            best = hg
    return best


def attention(q, k, v, mask_f, scale, out_dtype=jnp.bfloat16):
    """q,k,v:(B,nH,S,Dh); mask_f:(B,1,S) f32 key mask; causal+padding mask in-kernel."""
    B, nH, S, Dh = q.shape
    hg = _heads_per_block(nH, S)
    kernel = functools.partial(_attention_kernel, scale=scale)
    cost = pl.CostEstimate(
        flops=int(4 * B * nH * S * S * Dh),
        transcendentals=int(B * nH * S * S),
        bytes_accessed=int(4 * B * nH * S * Dh * 2))
    return pl.pallas_call(
        kernel,
        out_shape=jax.ShapeDtypeStruct((B, nH, S, Dh), out_dtype),
        grid=(B, nH // hg),
        in_specs=[
            pl.BlockSpec((1, hg, S, Dh), lambda b, g: (b, g, 0, 0)),
            pl.BlockSpec((1, hg, S, Dh), lambda b, g: (b, g, 0, 0)),
            pl.BlockSpec((1, hg, S, Dh), lambda b, g: (b, g, 0, 0)),
            pl.BlockSpec((1, 1, S), lambda b, g: (b, 0, 0)),
        ],
        out_specs=pl.BlockSpec((1, hg, S, Dh), lambda b, g: (b, g, 0, 0)),
        compiler_params=pltpu.CompilerParams(
            dimension_semantics=("parallel", "parallel"),
            vmem_limit_bytes=_VMEM_LIMIT),
        cost_estimate=cost,
    )(q, k, v, mask_f)


# ----------------------------------------------------------------------------
# Model: GPT2-style backbone + classifier head
# ----------------------------------------------------------------------------
def init_params(key, *, vocab, max_pos, hidden, n_layer, n_head, num_classes, seq_len):
    std = 0.02
    keys = jax.random.split(key, 3 + 4 * n_layer)
    ki = iter(keys)
    p = {
        "wte": jax.random.normal(next(ki), (vocab, hidden), jnp.float32) * std,
        "wpe": jax.random.normal(next(ki), (max_pos, hidden), jnp.float32) * std,
        "ln_f_g": jnp.ones((hidden,), jnp.float32),
        "ln_f_b": jnp.zeros((hidden,), jnp.float32),
        "fc1_w": (jax.random.normal(next(ki), (hidden * seq_len, num_classes),
                                    jnp.float32) * std).astype(jnp.bfloat16),
        "fc1_b": jnp.zeros((num_classes,), jnp.float32),
        "layers": [],
    }
    for _ in range(n_layer):
        layer = {
            "ln1_g": jnp.ones((hidden,), jnp.float32),
            "ln1_b": jnp.zeros((hidden,), jnp.float32),
            "w_qkv": (jax.random.normal(next(ki), (hidden, 3 * hidden), jnp.float32)
                      * std).astype(jnp.bfloat16),
            "b_qkv": jnp.zeros((3 * hidden,), jnp.float32),
            "w_attn_proj": (jax.random.normal(next(ki), (hidden, hidden), jnp.float32)
                            * std).astype(jnp.bfloat16),
            "b_attn_proj": jnp.zeros((hidden,), jnp.float32),
            "ln2_g": jnp.ones((hidden,), jnp.float32),
            "ln2_b": jnp.zeros((hidden,), jnp.float32),
            "w_fc": (jax.random.normal(next(ki), (hidden, 4 * hidden), jnp.float32)
                     * std).astype(jnp.bfloat16),
            "b_fc": jnp.zeros((4 * hidden,), jnp.float32),
            "w_mlp_proj": (jax.random.normal(next(ki), (4 * hidden, hidden), jnp.float32)
                           * std).astype(jnp.bfloat16),
            "b_mlp_proj": jnp.zeros((hidden,), jnp.float32),
        }
        p["layers"].append(layer)
    return p


def gpt2_classifier_forward(params, input_id, mask, *, n_head):
    B, S = input_id.shape
    H = params["wte"].shape[1]
    Dh = H // n_head
    assert params["fc1_w"].shape[0] == S * H, "classifier head is tied to max_seq_len"

    # Embeddings (gather stays in JAX glue).
    h = (params["wte"][input_id] + params["wpe"][jnp.arange(S)][None, :, :])
    h = h.reshape(B * S, H).astype(jnp.float32)                       # residual stream f32

    # Key-padding mask as (B,1,S) f32; causal part is built inside the kernel.
    mask_f = mask.astype(jnp.float32)[:, None, :]
    scale = 1.0 / (Dh ** 0.5)

    for lp in params["layers"]:
        # --- attention block: LN1 fused into QKV matmul ---
        qkv = ln_matmul_bias(h, lp["w_qkv"], lp["b_qkv"], lp["ln1_g"], lp["ln1_b"])
        qkv = qkv.reshape(B, S, 3, n_head, Dh).transpose(2, 0, 3, 1, 4)  # (3,B,nH,S,Dh)
        attn = attention(qkv[0], qkv[1], qkv[2], mask_f, scale=scale)    # (B,nH,S,Dh) bf16
        attn = attn.transpose(0, 2, 1, 3).reshape(B * S, H)
        # attn_proj with bias + residual fused in the epilogue
        h = matmul_bias_residual(attn, lp["w_attn_proj"], lp["b_attn_proj"], residual=h)
        # --- MLP block: LN2 fused into fc matmul (with fused GELU) ---
        mlp = ln_matmul_bias(h, lp["w_fc"], lp["b_fc"], lp["ln2_g"], lp["ln2_b"],
                             activation="gelu")
        h = matmul_bias_residual(mlp, lp["w_mlp_proj"], lp["b_mlp_proj"], residual=h)

    # Final LayerNorm, row-tiled; output bf16 feeds the classifier matmul.
    h = layernorm(h, params["ln_f_g"], params["ln_f_b"], out_dtype=jnp.bfloat16)
    gpt_out = h.reshape(B, S * H)                                     # torch .view(B,-1)

    # Classifier: pad N to a lane-dense 128 multiple, K-tiled contraction, slice after.
    C = params["fc1_b"].shape[0]
    Np = ((C + 127) // 128) * 128
    w_pad = jnp.zeros((S * H, Np), jnp.bfloat16).at[:, :C].set(params["fc1_w"])
    b_pad = jnp.zeros((Np,), jnp.float32).at[:C].set(params["fc1_b"])
    logits = matmul_bias_residual(gpt_out, w_pad, b_pad, out_dtype=jnp.float32)[:, :C]
    return logits


# ----------------------------------------------------------------------------
if __name__ == "__main__":
    # Small, forward-consistent shapes.
    B, S, H = 2, 8, 32
    N_HEAD, N_LAYER = 4, 2
    VOCAB, NUM_CLASSES = 50, 5

    key = jax.random.PRNGKey(0)
    k_param, k_ids = jax.random.split(key)

    params = init_params(k_param, vocab=VOCAB, max_pos=S, hidden=H,
                         n_layer=N_LAYER, n_head=N_HEAD,
                         num_classes=NUM_CLASSES, seq_len=S)

    input_id = jax.random.randint(k_ids, (B, S), 0, VOCAB, dtype=jnp.int32)
    # attention mask: batch 0 has two padding tokens at the end, batch 1 is full.
    mask = jnp.array([[1, 1, 1, 1, 1, 1, 0, 0],
                      [1, 1, 1, 1, 1, 1, 1, 1]], dtype=jnp.int32)

    logits = gpt2_classifier_forward(params, input_id, mask, n_head=N_HEAD)
    jax.block_until_ready(logits)
    assert logits.shape == (B, NUM_CLASSES) and logits.dtype == jnp.float32
    assert bool(jnp.all(jnp.isfinite(logits)))
    # TODO(synk): pretrained GPT-2 checkpoint weights are not loaded (synthetic init).
    print("KERNEL_OK")
</pallas_src>

<mosaic_0001>
module attributes {stable_mosaic.version = 11 : i64} {
  func.func @_ln_matmul_kernel(%arg0: i32, %arg1: i32, %arg2: memref<16x32xf32, #tpu.memory_space<vmem>>, %arg3: memref<32x96xbf16, #tpu.memory_space<vmem>>, %arg4: memref<1x96xf32, #tpu.memory_space<vmem>>, %arg5: memref<1x32xf32, #tpu.memory_space<vmem>>, %arg6: memref<1x32xf32, #tpu.memory_space<vmem>>, %arg7: memref<16x96xbf16, #tpu.memory_space<vmem>>) attributes {dimension_semantics = [#tpu.dimension_semantics<parallel>, #tpu.dimension_semantics<parallel>], iteration_bounds = array<i64: 1, 1>, scalar_prefetch = 0 : i64, scratch_operands = 0 : i64, tpu.core_type = #tpu.core_type<tc>, window_params = [{transform_indices = @transform_0, window_bounds = array<i64: 16, 32>}, {transform_indices = @transform_1, window_bounds = array<i64: 32, 96>}, {transform_indices = @transform_2, window_bounds = array<i64: 1, 96>}, {pipeline_mode = #tpu.pipeline_mode<synchronous>, transform_indices = @transform_3, window_bounds = array<i64: 1, 32>}, {pipeline_mode = #tpu.pipeline_mode<synchronous>, transform_indices = @transform_4, window_bounds = array<i64: 1, 32>}, {transform_indices = @transform_5, window_bounds = array<i64: 16, 96>}]} {
    %c0 = arith.constant 0 : index
    %c0_0 = arith.constant 0 : index
    %0 = vector.load %arg2[%c0, %c0_0] : memref<16x32xf32, #tpu.memory_space<vmem>>, vector<16x32xf32>
    %cst = arith.constant dense<0.000000e+00> : vector<16xf32>
    %1 = vector.multi_reduction <add>, %0, %cst [1] : vector<16x32xf32> to vector<16xf32>
    %2 = vector.shape_cast %1 : vector<16xf32> to vector<16x1xf32>
    %cst_1 = arith.constant 3.200000e+01 : f32
    %3 = vector.broadcast %cst_1 : f32 to vector<16x1xf32>
    %4 = arith.divf %2, %3 : vector<16x1xf32>
    %5 = vector.broadcast %4 : vector<16x1xf32> to vector<16x32xf32>
    %6 = arith.subf %0, %5 : vector<16x32xf32>
    %7 = vector.broadcast %4 : vector<16x1xf32> to vector<16x32xf32>
    %8 = arith.subf %0, %7 : vector<16x32xf32>
    %9 = arith.mulf %6, %8 : vector<16x32xf32>
    %cst_2 = arith.constant dense<0.000000e+00> : vector<16xf32>
    %10 = vector.multi_reduction <add>, %9, %cst_2 [1] : vector<16x32xf32> to vector<16xf32>
    %11 = vector.shape_cast %10 : vector<16xf32> to vector<16x1xf32>
    %cst_3 = arith.constant 3.200000e+01 : f32
    %12 = vector.broadcast %cst_3 : f32 to vector<16x1xf32>
    %13 = arith.divf %11, %12 : vector<16x1xf32>
    %14 = vector.broadcast %4 : vector<16x1xf32> to vector<16x32xf32>
    %15 = arith.subf %0, %14 : vector<16x32xf32>
    %cst_4 = arith.constant 9.99999974E-6 : f32
    %16 = vector.broadcast %cst_4 : f32 to vector<16x1xf32>
    %17 = arith.addf %13, %16 : vector<16x1xf32>
    %18 = math.rsqrt %17 : vector<16x1xf32>
    %19 = vector.broadcast %18 : vector<16x1xf32> to vector<16x32xf32>
    %20 = arith.mulf %15, %19 : vector<16x32xf32>
    %c0_5 = arith.constant 0 : index
    %c0_6 = arith.constant 0 : index
    %21 = vector.load %arg5[%c0_5, %c0_6] : memref<1x32xf32, #tpu.memory_space<vmem>>, vector<1x32xf32>
    %22 = vector.broadcast %21 : vector<1x32xf32> to vector<16x32xf32>
    %23 = arith.mulf %20, %22 : vector<16x32xf32>
    %c0_7 = arith.constant 0 : index
    %c0_8 = arith.constant 0 : index
    %24 = vector.load %arg6[%c0_7, %c0_8] : memref<1x32xf32, #tpu.memory_space<vmem>>, vector<1x32xf32>
    %25 = vector.broadcast %24 : vector<1x32xf32> to vector<16x32xf32>
    %26 = arith.addf %23, %25 : vector<16x32xf32>
    %27 = arith.truncf %26 : vector<16x32xf32> to vector<16x32xbf16>
    %c0_9 = arith.constant 0 : index
    %c0_10 = arith.constant 0 : index
    %28 = vector.load %arg3[%c0_9, %c0_10] : memref<32x96xbf16, #tpu.memory_space<vmem>>, vector<32x96xbf16>
    %cst_11 = arith.constant dense<0.000000e+00> : vector<16x96xf32>
    %29 = tpu.matmul %27, %28, %cst_11 {dimension_numbers = #tpu.dot_dimension_numbers<[1], [0], [0], [1], [0, 0, 1, 1], [], []>} : vector<16x32xbf16>, vector<32x96xbf16>, vector<16x96xf32> -> vector<16x96xf32>
    %c0_12 = arith.constant 0 : index
    %c0_13 = arith.constant 0 : index
    %30 = vector.load %arg4[%c0_12, %c0_13] : memref<1x96xf32, #tpu.memory_space<vmem>>, vector<1x96xf32>
    %31 = vector.broadcast %30 : vector<1x96xf32> to vector<16x96xf32>
    %32 = arith.addf %29, %31 : vector<16x96xf32>
    %33 = arith.truncf %32 : vector<16x96xf32> to vector<16x96xbf16>
    %c0_14 = arith.constant 0 : index
    %c0_15 = arith.constant 0 : index
    %34 = vector.load %arg7[%c0_14, %c0_15] : memref<16x96xbf16, #tpu.memory_space<vmem>>, vector<16x96xbf16>
    tpu.vector_store %arg7[%c0_14, %c0_15], %33 {strides = array<i32>} : memref<16x96xbf16, #tpu.memory_space<vmem>>, vector<16x96xbf16>,
    return
  }
  func.func @transform_0(%arg0: i32, %arg1: i32) -> (i32, i32) {
    %c0_i32 = arith.constant 0 : i32
    %c0_i32_0 = arith.constant 0 : i32
    return %arg0, %c0_i32 : i32, i32
  }
  func.func @transform_1(%arg0: i32, %arg1: i32) -> (i32, i32) {
    %c0_i32 = arith.constant 0 : i32
    %c0_i32_0 = arith.constant 0 : i32
    return %c0_i32, %arg1 : i32, i32
  }
  func.func @transform_2(%arg0: i32, %arg1: i32) -> (i32, i32) {
    %c0_i32 = arith.constant 0 : i32
    %c0_i32_0 = arith.constant 0 : i32
    return %c0_i32, %arg1 : i32, i32
  }
  func.func @transform_3(%arg0: i32, %arg1: i32) -> (i32, i32) {
    %c0_i32 = arith.constant 0 : i32
    %c0_i32_0 = arith.constant 0 : i32
    %c0_i32_1 = arith.constant 0 : i32
    return %c0_i32, %c0_i32_0 : i32, i32
  }
  func.func @transform_4(%arg0: i32, %arg1: i32) -> (i32, i32) {
    %c0_i32 = arith.constant 0 : i32
    %c0_i32_0 = arith.constant 0 : i32
    %c0_i32_1 = arith.constant 0 : i32
    return %c0_i32, %c0_i32_0 : i32, i32
  }
  func.func @transform_5(%arg0: i32, %arg1: i32) -> (i32, i32) {
    %c0_i32 = arith.constant 0 : i32
    return %arg0, %arg1 : i32, i32
  }
}

</mosaic_0001>

<bundles_post_ra>
// kernel: tpu_custom_call.1
= control target key start
LH: loop header
LB: loop body
LE: loop exit
PB: predicated region body
PF: predicated region fallthrough
CT: control target
= control target key end

     0   :  { %10 = vsyncpa [#allocation3], 0  ;;  %s365_s0 = inlined_call_operand.hbm [shape: f32[16,32], index: 0, kind: input, shape index: {}]   ;;  %s366_s1 = inlined_call_operand.hbm [shape: bf16[32,96], index: 1, kind: input, shape index: {}]   ;;  %s367_s2 = inlined_call_operand.vmem [shape: f32[1,96], index: 2, kind: input, shape index: {}]   ;;  %s368_s3 = inlined_call_operand.vmem [shape: f32[1,32], index: 3, kind: input, shape index: {}]   ;;  %s369_s4 = inlined_call_operand.vmem [shape: f32[1,32], index: 4, kind: input, shape index: {}]   ;;  %s370_s5 = inlined_call_operand.hbm [shape: bf16[16,96], index: 5, kind: output, shape index: {}]  }
   0x1   :  { %11 = vsyncpa [#allocation6], 0 }
   0x2   :  { %12 = vsyncpa [#allocation4], 0  ;;  %s297_s18 = smov [#allocation2]  }
   0x3   :  { %s18_s19 = sshll.u32 %s297_s18, 4  ;;  %s19_s19 = int_to_ptr.vmem [resolvable:$true] %s18_s19 }
   0x4   :  { %s239_s20 = scalar_lea.vmem %s19_s19, 256  ;;  %p244_p1 = scmp.lt.s32.totalorder %s19_s19, %s19_s19 }
   0x5   :  { %p240_p0 = scmp.ne.s32.totalorder %s19_s19, %s239_s20  ;;  %p245_p2 = scmp.lt.s32.totalorder %s239_s20, %s239_s20 }
   0x7   :  { %p246_p3 = por %p245_p2, %p244_p1 }
   0x9   :  { %p247_p4 = pnand %p246_p3, %p240_p0 }
   0xb   :  { %250 = shalt.err (!%p247_p4)
}
   0xc   :  { %s298_s21 = smov 128   ;;  %s299_s22 = smov 8  }
   0xd   :  { %24 = dma.hbm_to_vmem [thread:$0]  %s365_s0, 256, %s19_s19, [#allocation3], %s298_s21, %s298_s21, %s299_s22  }
   0xe   :  { %s300_s25 = smov [#allocation5]  }
   0xf   :  { %s30_s26 = sshll.u32 %s300_s25, 4  ;;  %s31_s26 = int_to_ptr.vmem [resolvable:$true] %s30_s26 }
  0x10   :  { %s259_s27 = scalar_lea.vmem %s31_s26, 256  ;;  %p264_p6 = scmp.lt.s32.totalorder %s31_s26, %s31_s26 }
  0x11   :  { %p260_p5 = scmp.ne.s32.totalorder %s31_s26, %s259_s27  ;;  %p265_p7 = scmp.lt.s32.totalorder %s259_s27, %s259_s27 }
  0x13   :  { %p266_p8 = por %p265_p7, %p264_p6 }
  0x15   :  { %p267_p9 = pnand %p266_p8, %p260_p5 }
  0x17   :  { %270 = shalt.err (!%p267_p9)
}
  0x18   :  { %s301_s28 = smov 64   ;;  %s302_s29 = smov 4  }
  0x19   :  { %36 = dma.hbm_to_vmem [thread:$0]  %s366_s1, 256, %s31_s26, [#allocation6], %s301_s28, %s301_s28, %s302_s29  }
  0x1a   :  { %291 = dma.done.wait [#allocation3], 256  }
  0x1b   :  { %292 = vsyncadd [#allocation3], 4294967040 }
  0x1c   :  { %293 = dma.done.wait [#allocation6], 256  }
  0x1d   :  { %294 = vsyncadd [#allocation6], 4294967040  ;;  %vm52_vm0 = vcmask 261120   ;;  %v50_v0 = vld [vmem:[#allocation2] sm:$0xff]  ;;  %v51_v1 = vld [vmem:[#allocation2 + $0x8] sm:$0xff]  ;;  %v303_v15 = vmov 0.0  }
  0x1e   :  { %v53_v2 = vsel %vm52_vm0, %v50_v0, 0.0  ;;  %v56_v3 = vsel %vm52_vm0, %v51_v1, 0.0  ;;  %v225_v14 = vld [vmem:[#allocation5 + $0x8] sm:$0xff]   ;;  %208 = vmatprep.subr.bf16.mxu0 %v303_v15  ;;  %vm304_vm1 = vmmov 0   ;;  %v226_v16 = vld [vmem:[#allocation5] sm:$0xff]   ;;  %vm174_vm2 = vcmask 781312  }
  0x1f   :  { %54 = vadd.xlane.f32.xlu0 %v53_v2  ;;  %212 = vmatprep.mubr.msk.bf16.mxu0 %vm304_vm1, %v303_v15  ;;  %v195_v25 = vld [vmem:[%s368_s3] ss:$0 sm:$0xff]  ;;  %s305_s3 = smov [#allocation7]  }
  0x20   :  { %209 = vmatpush3.bf16.msra.mxu0 %v225_v14  ;;  %v196_v29 = vld [vmem:[%s369_s4] ss:$0 sm:$0xff]  ;;  %s182_s11 = sshll.u32 %s305_s3, 4  ;;  %s183_s11 = int_to_ptr.vmem [resolvable:$true] %s182_s11 }
  0x21   :  { %210 = vmatprep.subr.bf16.mxu0 %v303_v15  ;;  %v197_v34 = vld [vmem:[%s367_s2] ss:$0 sm:$0xff]  ;;  %s271_s4 = scalar_lea.vmem %s183_s11, 128  ;;  %p276_p11 = scmp.lt.s32.totalorder %s183_s11, %s183_s11 }
  0x22   :  { %p272_p10 = scmp.ne.s32.totalorder %s183_s11, %s271_s4  ;;  %p277_p12 = scmp.lt.s32.totalorder %s271_s4, %s271_s4 }
  0x23   :  { %57 = vadd.xlane.f32.xlu0 %v56_v3 }
  0x24   :  { %211 = vmatpush3.bf16.msra.mxu0 %v226_v16  ;;  %p278_p13 = por %p277_p12, %p276_p11 }
  0x26   :  { %p279_p0 = pnand %p278_p13, %p272_p10 }
  0xa8   :  { %v55_v4 = vpop.xlane.xlu0 %54 }
  0xa9   :  { %v60_v5 = vmul.f32 0.03125, %v55_v4 }
  0xab   :  { %v62_v6 = vsub.f32 %v50_v0, %v60_v5 }
  0xac   :  { %v58_v7 = vpop.xlane.xlu0 %57 }
  0xad   :  { %v61_v8 = vmul.f32 0.03125, %v58_v7  ;;  %v64_v9 = vmul.f32 %v62_v6, %v62_v6 }
  0xaf   :  { %v63_v10 = vsub.f32 %v51_v1, %v61_v8  ;;  %v66_v11 = vsel %vm52_vm0, %v64_v9, 0.0 }
  0xb0   :  { %67 = vadd.xlane.f32.xlu1 %v66_v11 }
  0xb1   :  { %v65_v12 = vmul.f32 %v63_v10, %v63_v10 }
  0xb3   :  { %v69_v13 = vsel %vm52_vm0, %v65_v12, 0.0 }
  0xb4   :  { %70 = vadd.xlane.f32.xlu1 %v69_v13 }
 0x139   :  { %v68_v17 = vpop.xlane.xlu1 %67 }
 0x13a   :  { %v72_v18 = vmul.f32 0.03125, %v68_v17 }
 0x13c   :  { %v74_v19 = vadd.f32 1e-05, %v72_v18 }
 0x13d   :  { %v71_v20 = vpop.xlane.xlu1 %70 }
 0x13e   :  { %227 = vrsqrt.f32 %v74_v19  ;;  %v73_v21 = vmul.f32 0.03125, %v71_v20 }
 0x140   :  { %v75_v22 = vadd.f32 1e-05, %v73_v21 }
 0x142   :  { %229 = vrsqrt.f32 %v75_v22 }
 0x14b   :  { %v228_v23 = vpop.eup %227 }
 0x14c   :  { %v78_v24 = vmul.f32 %v228_v23, %v62_v6 }
 0x14e   :  { %v87_v28 = vmul.f32 %v195_v25, %v78_v24 }
 0x14f   :  { %v230_v26 = vpop.eup %229 }
 0x150   :  { %v79_v27 = vmul.f32 %v230_v26, %v63_v10  ;;  %v96_v31 = vadd.f32 %v196_v29, %v87_v28 }
 0x152   :  { %v88_v30 = vmul.f32 %v195_v25, %v79_v27 }
 0x154   :  { %v97_v32 = vadd.f32 %v196_v29, %v88_v30 }
 0x156   :  { %v98_v33 = vpack.c.bf16 %v97_v32, %v96_v31 }
 0x158   :  { %213 = vmatmul.mubr.msk.bf16.vlgmr.msra.gmra.mxu0 %vm52_vm0, %v98_v33 }
 0x218   :  { %v159_v35 = vpop.f32.mrf.mxu0 }
 0x219   :  { %v160_v36 = vadd.f32 %v197_v34, %v159_v35 }
 0x21a   :  { %v214_v37 = vpop.f32.mrf.mxu0 }
 0x21b   :  { %v203_v38 = vpack.c.bf16 %v160_v36, %v160_v36 }
 0x21c   :  { %v162_v39 = vpop.f32.mrf.mxu0 }
 0x21d   :  { %v163_v40 = vadd.f32 %v197_v34, %v162_v39  ;;  %175 = vst.msk [vmem:[#allocation7] sm:$0xf] %vm174_vm2, %v203_v38 }
 0x21e   :  { %v215_v41 = vpop.f32.mrf.mxu0 }
 0x21f   :  { %v204_v42 = vpack.c.bf16 %v163_v40, %v163_v40 }
 0x221   :  { %176 = vst.msk [vmem:[#allocation7 + $0x4] sm:$0xf] %vm174_vm2, %v204_v42 }
 0x222   :  { %282 = shalt.err (!%p279_p0)
}
 0x223   :  { %188 = dma.vmem_to_hbm [thread:$0]  %s183_s11, 128, %s370_s5, [#allocation4], %s301_s28, %s301_s28, %s302_s29  }
 0x224   :  { %295 = dma.done.wait [#allocation4], 128  }
 0x225   :  { %296 = vsyncadd [#allocation4], 4294967168 }
 0x226   :  { %192 = vsyncpa [#allocation3], 1 }
 0x227   :  { %193 = vsyncpa [#allocation6], 1 }
 0x228   :  { %194 = vsyncpa [#allocation4], 1 }

</bundles_post_ra>
